<compile_context>
chip_gen: v6e
topology: v6e:2x2x1
jax: 0.10.0
libtpu: 0.0.40
codegen_flags: <defaults>
</compile_context>

<pallas_src>
import functools

import jax
import jax.numpy as jnp
from jax.experimental import pallas as pl
from jax.experimental.pallas import tpu as pltpu


def _dense_block_kernel(x_ref, halo_ref, scale_ref, shift_ref, w_ref, o_ref,
                        *, n_pad):
    # x_ref:     (B, C, LT)     raw input tile (non-overlapping, lane dense)
    # halo_ref:  (B, C, 2P)     raw left/right boundary columns for this tile
    # scale_ref: (C, 1)         folded BN scale  = gamma / sqrt(running_var+eps)
    # shift_ref: (C, 1)         folded BN shift  = beta - running_mean * scale
    # w_ref:     (K, G, C)      conv weight taps (f32)
    # o_ref:     (B, C+G, LT)   fused output tile: [input | new_features]
    B, C, LT = x_ref.shape
    K, G, _ = w_ref.shape
    P = n_pad

    i = pl.program_id(0)
    n_l = pl.num_programs(0)

    x = x_ref[...]                                   # (B, C, LT) f32
    scale = scale_ref[...][None, :, :]               # (1, C, 1)
    shift = shift_ref[...][None, :, :]

    # BatchNorm1d (eval, folded) + ReLU, f32 on the VPU.
    h = jnp.maximum(x * scale + shift, 0.0)          # (B, C, LT)

    if P > 0:
        # Halos get the same BN+ReLU; conv's zero padding is applied AFTER the
        # activation in the PyTorch reference, so columns that fall outside the
        # original sequence (first/last tile only) must be exactly zero.
        hh = jnp.maximum(halo_ref[...] * scale + shift, 0.0)    # (B, C, 2P)
        hl = jnp.where(i > 0, hh[:, :, :P], 0.0)                # left halo
        hr = jnp.where(i < n_l - 1, hh[:, :, P:], 0.0)          # right halo
        hfull = jnp.concatenate([hl, h, hr], axis=-1)           # (B, C, LT+2P)
    else:
        hfull = h

    # Conv1d as K accumulated batched MXU matmuls (contraction over C).
    w = w_ref[...]                                   # (K, G, C)
    acc = None
    for k in range(K):
        wk = jnp.broadcast_to(w[k][None], (B, G, C))             # tiny
        term = jnp.einsum('bgc,bcl->bgl', wk, hfull[:, :, k:k + LT],
                          preferred_element_type=jnp.float32)
        acc = term if acc is None else acc + term

    # Fused DenseNet concatenation: [input, new_features] along channels.
    o_ref[:, :C, :] = x.astype(o_ref.dtype)
    o_ref[:, C:, :] = acc.astype(o_ref.dtype)


def _pick_l_tile(B, C, G, L, P):
    """Largest lane-dense (multiple-of-128) divisor of L fitting a VMEM budget,
    preferring >= 2 grid steps (v7x has 2 TensorCores)."""
    def step_bytes(lt):
        inp = 2 * B * C * lt * 4                 # double-buffered input block
        out = 2 * B * (C + G) * lt * 4           # double-buffered output block
        work = (2 * B * C * (lt + 2 * P) + B * G * lt) * 4   # hfull/slice/acc
        return inp + out + work

    budget = 28 * 1024 * 1024   # conservative: fits v7x 64 MiB VMEM w/ headroom
    cands = [t for t in range(128, L + 1, 128)
             if L % t == 0 and step_bytes(t) <= budget]
    if not cands:
        # TODO(synk): ragged tiling for long L with no 128-multiple divisor;
        # such inputs run as a single full-length (un-pipelined) block.
        return L
    multi = [t for t in cands if L // t >= 2]
    return max(multi) if multi else max(cands)


def dense_basic_block(x, bn_gamma, bn_beta, bn_mean, bn_var, conv_w,
                      eps=1e-5, l_tile=None):
    """x: (B, C_in, L) float32; conv_w: (G, C_in, K). Returns (B, C_in+G, L)."""
    B, C, L = x.shape
    G, Cw, K = conv_w.shape
    # TODO(synk): groups > 1 interleaved concat and dropout > 0 paths are not
    # implemented; the default config (groups=1, dropout=0 -> Identity) is
    # reproduced here.
    assert Cw == C, "groups != 1 not supported"
    assert K % 2 == 1, "'same' padding assumes odd filter_length"
    P = (K - 1) // 2

    x = x.astype(jnp.float32)

    if l_tile is None:
        l_tile = _pick_l_tile(B, C, G, L, P)
    assert L % l_tile == 0, "l_tile must divide seq_len"
    nL = L // l_tile

    # Fold eval-mode BatchNorm1d into per-channel scale/shift (plain-JAX glue).
    inv = bn_gamma.astype(jnp.float32) / jnp.sqrt(bn_var.astype(jnp.float32) + eps)
    scale = inv.reshape(C, 1)
    shift = (bn_beta.astype(jnp.float32) - bn_mean.astype(jnp.float32) * inv).reshape(C, 1)

    # Conv weight as per-tap slabs (K, G, C).
    wt = jnp.transpose(conv_w.astype(jnp.float32), (2, 0, 1))

    # Tiny halo array (nL, B, C, 2P): the raw neighbour columns each tile needs
    # beyond its own non-overlapping block; zeros at the sequence boundaries.
    halo_w = 2 * P if P > 0 else 2     # dummy width for K == 1
    if P > 0:
        xr = x.reshape(B, C, nL, l_tile)
        zpad = jnp.zeros((B, C, 1, P), jnp.float32)
        left = jnp.concatenate([zpad, xr[:, :, :-1, l_tile - P:]], axis=2)
        right = jnp.concatenate([xr[:, :, 1:, :P], zpad], axis=2)
        halo = jnp.concatenate([left, right], axis=3)       # (B, C, nL, 2P)
        halo = jnp.transpose(halo, (2, 0, 1, 3))            # (nL, B, C, 2P)
    else:
        halo = jnp.zeros((nL, B, C, halo_w), jnp.float32)

    kernel = functools.partial(_dense_block_kernel, n_pad=P)

    flops = 2 * B * G * C * K * L + 4 * B * C * L
    bytes_accessed = 4 * (B * C * L + B * (C + G) * L + K * G * C + 2 * C
                          + nL * B * C * halo_w)

    out = pl.pallas_call(
        kernel,
        out_shape=jax.ShapeDtypeStruct((B, C + G, L), jnp.float32),
        grid=(nL,),
        in_specs=[
            pl.BlockSpec((B, C, l_tile), lambda i: (0, 0, i)),
            pl.BlockSpec((None, B, C, halo_w), lambda i: (i, 0, 0, 0)),
            pl.BlockSpec((C, 1), lambda i: (0, 0)),
            pl.BlockSpec((C, 1), lambda i: (0, 0)),
            pl.BlockSpec((K, G, C), lambda i: (0, 0, 0)),
        ],
        out_specs=pl.BlockSpec((B, C + G, l_tile), lambda i: (0, 0, i)),
        compiler_params=pltpu.CompilerParams(
            dimension_semantics=("parallel",),
            vmem_limit_bytes=48 * 1024 * 1024),
        cost_estimate=pl.CostEstimate(
            flops=flops, transcendentals=0, bytes_accessed=bytes_accessed),
    )(x, halo, scale, shift, wt)
    return out


def _reference(x, bn_gamma, bn_beta, bn_mean, bn_var, conv_w, eps=1e-5):
    # Pure-JAX reference mirroring PyTorch semantics (f32 everywhere).
    scale = bn_gamma / jnp.sqrt(bn_var + eps)
    shift = bn_beta - bn_mean * scale
    h = jnp.maximum(x * scale[None, :, None] + shift[None, :, None], 0.0)
    K = conv_w.shape[-1]
    P = (K - 1) // 2
    new = jax.lax.conv_general_dilated(
        h, conv_w, window_strides=(1,), padding=[(P, P)],
        dimension_numbers=("NCH", "OIH", "NCH"))
    return jnp.concatenate([x, new], axis=1)


if __name__ == "__main__":
    # Small shapes consistent with the module's forward: (batch, channels, seq_len)
    B, C_IN, L = 2, 4, 1024          # -> l_tile=512, grid=(2,), fused output
    GROWTH_RATE, K = 8, 3            # filter_length = 3 (odd -> exact "same" pad)

    key = jax.random.PRNGKey(0)
    kx, kw, kg, kb, km, kv = jax.random.split(key, 6)

    x = jax.random.normal(kx, (B, C_IN, L), dtype=jnp.float32)

    # Deterministic synthetic parameters (shapes per nn.BatchNorm1d / nn.Conv1d).
    conv_w = 0.1 * jax.random.normal(kw, (GROWTH_RATE, C_IN, K), dtype=jnp.float32)
    bn_gamma = 1.0 + 0.1 * jax.random.normal(kg, (C_IN,), dtype=jnp.float32)
    bn_beta = 0.1 * jax.random.normal(kb, (C_IN,), dtype=jnp.float32)
    bn_mean = 0.1 * jax.random.normal(km, (C_IN,), dtype=jnp.float32)
    bn_var = jnp.abs(1.0 + 0.1 * jax.random.normal(kv, (C_IN,), dtype=jnp.float32))

    out = jax.block_until_ready(
        jax.jit(dense_basic_block)(x, bn_gamma, bn_beta, bn_mean, bn_var, conv_w))
    ref = _reference(x, bn_gamma, bn_beta, bn_mean, bn_var, conv_w)

    assert out.shape == (B, C_IN + GROWTH_RATE, L)
    # f32 operands with f32 accumulation; tolerance kept loose in case the MXU
    # rounds matmul operands at default precision.
    assert jnp.allclose(out, ref, atol=2e-2, rtol=2e-2), "mismatch vs reference"

    print("KERNEL_OK")
</pallas_src>

<mosaic_0001>
module attributes {stable_mosaic.version = 11 : i64} {
  func.func @_dense_block_kernel(%arg0: i32, %arg1: memref<2x4x512xf32, #tpu.memory_space<vmem>>, %arg2: memref<1x2x4x2xf32, #tpu.memory_space<vmem>>, %arg3: memref<4x1xf32, #tpu.memory_space<vmem>>, %arg4: memref<4x1xf32, #tpu.memory_space<vmem>>, %arg5: memref<3x8x4xf32, #tpu.memory_space<vmem>>, %arg6: memref<2x12x512xf32, #tpu.memory_space<vmem>>) attributes {dimension_semantics = [#tpu.dimension_semantics<parallel>], iteration_bounds = array<i64: 2>, scalar_prefetch = 0 : i64, scratch_operands = 0 : i64, tpu.core_type = #tpu.core_type<tc>, window_params = [{transform_indices = @transform_0, window_bounds = array<i64: 2, 4, 512>}, {transform_indices = @transform_1, window_bounds = array<i64: 1, 2, 4, 2>}, {pipeline_mode = #tpu.pipeline_mode<synchronous>, transform_indices = @transform_2, window_bounds = array<i64: 4, 1>}, {pipeline_mode = #tpu.pipeline_mode<synchronous>, transform_indices = @transform_3, window_bounds = array<i64: 4, 1>}, {pipeline_mode = #tpu.pipeline_mode<synchronous>, transform_indices = @transform_4, window_bounds = array<i64: 3, 8, 4>}, {transform_indices = @transform_5, window_bounds = array<i64: 2, 12, 512>}]} {
    %c0 = arith.constant 0 : index
    %c0_0 = arith.constant 0 : index
    %c0_1 = arith.constant 0 : index
    %0 = vector.load %arg1[%c0, %c0_0, %c0_1] : memref<2x4x512xf32, #tpu.memory_space<vmem>>, vector<2x4x512xf32>
    %c0_2 = arith.constant 0 : index
    %c0_3 = arith.constant 0 : index
    %1 = vector.load %arg3[%c0_2, %c0_3] : memref<4x1xf32, #tpu.memory_space<vmem>>, vector<4x1xf32>
    %2 = vector.shape_cast %1 : vector<4x1xf32> to vector<1x4x1xf32>
    %c0_4 = arith.constant 0 : index
    %c0_5 = arith.constant 0 : index
    %3 = vector.load %arg4[%c0_4, %c0_5] : memref<4x1xf32, #tpu.memory_space<vmem>>, vector<4x1xf32>
    %4 = vector.shape_cast %3 : vector<4x1xf32> to vector<1x4x1xf32>
    %5 = vector.broadcast %2 : vector<1x4x1xf32> to vector<2x4x512xf32>
    %6 = arith.mulf %0, %5 : vector<2x4x512xf32>
    %7 = vector.broadcast %4 : vector<1x4x1xf32> to vector<2x4x512xf32>
    %8 = arith.addf %6, %7 : vector<2x4x512xf32>
    %cst = arith.constant 0.000000e+00 : f32
    %9 = vector.broadcast %cst : f32 to vector<2x4x512xf32>
    %10 = arith.maximumf %8, %9 : vector<2x4x512xf32>
    %c0_6 = arith.constant 0 : index
    %c0_7 = arith.constant 0 : index
    %c0_8 = arith.constant 0 : index
    %c0_9 = arith.constant 0 : index
    %11 = vector.load %arg2[%c0_6, %c0_7, %c0_8, %c0_9] : memref<1x2x4x2xf32, #tpu.memory_space<vmem>>, vector<1x2x4x2xf32>
    %12 = vector.shape_cast %11 : vector<1x2x4x2xf32> to vector<2x4x2xf32>
    %13 = vector.broadcast %2 : vector<1x4x1xf32> to vector<2x4x2xf32>
    %14 = arith.mulf %12, %13 : vector<2x4x2xf32>
    %15 = vector.broadcast %4 : vector<1x4x1xf32> to vector<2x4x2xf32>
    %16 = arith.addf %14, %15 : vector<2x4x2xf32>
    %cst_10 = arith.constant 0.000000e+00 : f32
    %17 = vector.broadcast %cst_10 : f32 to vector<2x4x2xf32>
    %18 = arith.maximumf %16, %17 : vector<2x4x2xf32>
    %c0_i32 = arith.constant 0 : i32
    %19 = arith.cmpi sgt, %arg0, %c0_i32 : i32
    %20 = vector.extract_strided_slice %18 {offsets = [0, 0, 0], sizes = [2, 4, 1], strides = [1, 1, 1]} : vector<2x4x2xf32> to vector<2x4x1xf32>
    %cst_11 = arith.constant 0.000000e+00 : f32
    %21 = vector.broadcast %cst_11 : f32 to vector<2x4x1xf32>
    %22 = arith.select %19, %20, %21 : vector<2x4x1xf32>
    %c1_i32 = arith.constant 1 : i32
    %23 = arith.cmpi slt, %arg0, %c1_i32 : i32
    %24 = vector.extract_strided_slice %18 {offsets = [0, 0, 1], sizes = [2, 4, 1], strides = [1, 1, 1]} : vector<2x4x2xf32> to vector<2x4x1xf32>
    %cst_12 = arith.constant 0.000000e+00 : f32
    %25 = vector.broadcast %cst_12 : f32 to vector<2x4x1xf32>
    %26 = arith.select %23, %24, %25 : vector<2x4x1xf32>
    %27 = tpu.concatenate %22, %10, %26 in 2 : vector<2x4x1xf32>, vector<2x4x512xf32>, vector<2x4x1xf32> -> vector<2x4x514xf32>
    %c0_13 = arith.constant 0 : index
    %c0_14 = arith.constant 0 : index
    %c0_15 = arith.constant 0 : index
    %28 = vector.load %arg5[%c0_13, %c0_14, %c0_15] : memref<3x8x4xf32, #tpu.memory_space<vmem>>, vector<3x8x4xf32>
    %29 = vector.extract_strided_slice %28 {offsets = [0, 0, 0], sizes = [1, 8, 4], strides = [1, 1, 1]} : vector<3x8x4xf32> to vector<1x8x4xf32>
    %30 = vector.shape_cast %29 : vector<1x8x4xf32> to vector<8x4xf32>
    %31 = vector.shape_cast %30 : vector<8x4xf32> to vector<1x8x4xf32>
    %32 = vector.shape_cast %31 : vector<1x8x4xf32> to vector<1x8x4xf32>
    %33 = vector.broadcast %32 : vector<1x8x4xf32> to vector<2x8x4xf32>
    %34 = vector.extract_strided_slice %27 {offsets = [0, 0, 0], sizes = [2, 4, 512], strides = [1, 1, 1]} : vector<2x4x514xf32> to vector<2x4x512xf32>
    "tpu.trace_start"() <{level = 10 : i32, message = "bgc,bcl->bgl"}> : () -> ()
    %cst_16 = arith.constant dense<0.000000e+00> : vector<2x8x512xf32>
    %35 = tpu.matmul %33, %34, %cst_16 {dimension_numbers = #tpu.dot_dimension_numbers<[2], [1], [1], [2], [0, 0, 0, 1, 1, 2], [0], [0]>} : vector<2x8x4xf32>, vector<2x4x512xf32>, vector<2x8x512xf32> -> vector<2x8x512xf32>
    "tpu.trace_stop"() : () -> ()
    %36 = vector.extract_strided_slice %28 {offsets = [1, 0, 0], sizes = [1, 8, 4], strides = [1, 1, 1]} : vector<3x8x4xf32> to vector<1x8x4xf32>
    %37 = vector.shape_cast %36 : vector<1x8x4xf32> to vector<8x4xf32>
    %38 = vector.shape_cast %37 : vector<8x4xf32> to vector<1x8x4xf32>
    %39 = vector.shape_cast %38 : vector<1x8x4xf32> to vector<1x8x4xf32>
    %40 = vector.broadcast %39 : vector<1x8x4xf32> to vector<2x8x4xf32>
    %41 = vector.extract_strided_slice %27 {offsets = [0, 0, 1], sizes = [2, 4, 512], strides = [1, 1, 1]} : vector<2x4x514xf32> to vector<2x4x512xf32>
    "tpu.trace_start"() <{level = 10 : i32, message = "bgc,bcl->bgl"}> : () -> ()
    %cst_17 = arith.constant dense<0.000000e+00> : vector<2x8x512xf32>
    %42 = tpu.matmul %40, %41, %cst_17 {dimension_numbers = #tpu.dot_dimension_numbers<[2], [1], [1], [2], [0, 0, 0, 1, 1, 2], [0], [0]>} : vector<2x8x4xf32>, vector<2x4x512xf32>, vector<2x8x512xf32> -> vector<2x8x512xf32>
    "tpu.trace_stop"() : () -> ()
    %43 = arith.addf %35, %42 : vector<2x8x512xf32>
    %44 = vector.extract_strided_slice %28 {offsets = [2, 0, 0], sizes = [1, 8, 4], strides = [1, 1, 1]} : vector<3x8x4xf32> to vector<1x8x4xf32>
    %45 = vector.shape_cast %44 : vector<1x8x4xf32> to vector<8x4xf32>
    %46 = vector.shape_cast %45 : vector<8x4xf32> to vector<1x8x4xf32>
    %47 = vector.shape_cast %46 : vector<1x8x4xf32> to vector<1x8x4xf32>
    %48 = vector.broadcast %47 : vector<1x8x4xf32> to vector<2x8x4xf32>
    %49 = vector.extract_strided_slice %27 {offsets = [0, 0, 2], sizes = [2, 4, 512], strides = [1, 1, 1]} : vector<2x4x514xf32> to vector<2x4x512xf32>
    "tpu.trace_start"() <{level = 10 : i32, message = "bgc,bcl->bgl"}> : () -> ()
    %cst_18 = arith.constant dense<0.000000e+00> : vector<2x8x512xf32>
    %50 = tpu.matmul %48, %49, %cst_18 {dimension_numbers = #tpu.dot_dimension_numbers<[2], [1], [1], [2], [0, 0, 0, 1, 1, 2], [0], [0]>} : vector<2x8x4xf32>, vector<2x4x512xf32>, vector<2x8x512xf32> -> vector<2x8x512xf32>
    "tpu.trace_stop"() : () -> ()
    %51 = arith.addf %43, %50 : vector<2x8x512xf32>
    %c0_19 = arith.constant 0 : index
    %c0_20 = arith.constant 0 : index
    %c0_21 = arith.constant 0 : index
    %52 = vector.load %arg6[%c0_19, %c0_20, %c0_21] : memref<2x12x512xf32, #tpu.memory_space<vmem>>, vector<2x4x512xf32>
    tpu.vector_store %arg6[%c0_19, %c0_20, %c0_21], %0 {strides = array<i32>} : memref<2x12x512xf32, #tpu.memory_space<vmem>>, vector<2x4x512xf32>,
    %c0_22 = arith.constant 0 : index
    %c4 = arith.constant 4 : index
    %c0_23 = arith.constant 0 : index
    %53 = vector.load %arg6[%c0_22, %c4, %c0_23] : memref<2x12x512xf32, #tpu.memory_space<vmem>>, vector<2x8x512xf32>
    tpu.vector_store %arg6[%c0_22, %c4, %c0_23], %51 {strides = array<i32>} : memref<2x12x512xf32, #tpu.memory_space<vmem>>, vector<2x8x512xf32>,
    return
  }
  func.func @transform_0(%arg0: i32) -> (i32, i32, i32) {
    %c0_i32 = arith.constant 0 : i32
    %c0_i32_0 = arith.constant 0 : i32
    %c0_i32_1 = arith.constant 0 : i32
    return %c0_i32, %c0_i32_0, %arg0 : i32, i32, i32
  }
  func.func @transform_1(%arg0: i32) -> (i32, i32, i32, i32) {
    %c0_i32 = arith.constant 0 : i32
    %c0_i32_0 = arith.constant 0 : i32
    %c0_i32_1 = arith.constant 0 : i32
    %c0_i32_2 = arith.constant 0 : i32
    return %arg0, %c0_i32, %c0_i32_0, %c0_i32_1 : i32, i32, i32, i32
  }
  func.func @transform_2(%arg0: i32) -> (i32, i32) {
    %c0_i32 = arith.constant 0 : i32
    %c0_i32_0 = arith.constant 0 : i32
    %c0_i32_1 = arith.constant 0 : i32
    return %c0_i32, %c0_i32_0 : i32, i32
  }
  func.func @transform_3(%arg0: i32) -> (i32, i32) {
    %c0_i32 = arith.constant 0 : i32
    %c0_i32_0 = arith.constant 0 : i32
    %c0_i32_1 = arith.constant 0 : i32
    return %c0_i32, %c0_i32_0 : i32, i32
  }
  func.func @transform_4(%arg0: i32) -> (i32, i32, i32) {
    %c0_i32 = arith.constant 0 : i32
    %c0_i32_0 = arith.constant 0 : i32
    %c0_i32_1 = arith.constant 0 : i32
    %c0_i32_2 = arith.constant 0 : i32
    return %c0_i32, %c0_i32_0, %c0_i32_1 : i32, i32, i32
  }
  func.func @transform_5(%arg0: i32) -> (i32, i32, i32) {
    %c0_i32 = arith.constant 0 : i32
    %c0_i32_0 = arith.constant 0 : i32
    %c0_i32_1 = arith.constant 0 : i32
    return %c0_i32, %c0_i32_0, %arg0 : i32, i32, i32
  }
}

</mosaic_0001>

<bundles_post_ra>
// kernel: dense_basic_block.1
= control target key start
LH: loop header
LB: loop body
LE: loop exit
PB: predicated region body
PF: predicated region fallthrough
CT: control target
= control target key end

     0   :  { %s1690_s18 = smov 0   ;;  %s1692_s19 = smov 0   ;;  %s1933_s0 = inlined_call_operand.vmem [shape: f32[2,4,1024], index: 0, kind: input, shape index: {}]   ;;  %s1934_s1 = inlined_call_operand.vmem [shape: f32[2,2,4,2], index: 1, kind: input, shape index: {}]   ;;  %s1935_s2 = inlined_call_operand.vmem [shape: f32[4,1], index: 2, kind: input, shape index: {}]   ;;  %s1936_s3 = inlined_call_operand.vmem [shape: f32[4,1], index: 3, kind: input, shape index: {}]   ;;  %s1937_s4 = inlined_call_operand.vmem [shape: f32[3,8,4], index: 4, kind: input, shape index: {}]   ;;  %s1938_s5 = inlined_call_operand.vmem [shape: f32[2,12,1024], index: 5, kind: output, shape index: {}]  }
   0x1   :  { %s1694_s20 = smov 0  }
   0x2 LB: > { %s1706_s21 = sadd.s32 4294967295, %s1652_s20   ;;  %s1709_s22 = sadd.s32 1, %s1652_s20   ;;  %s1652_s20 = sphi %s1694_s20, %s1942_s20   ;;  %s1648_s19 = sphi %s1692_s19, %s1941_s19   ;;  %s1644_s18 = sphi %s1690_s18, %s1940_s18  }
   0x3   : > { %s19_s23 = ssub.s32 %s1652_s20, %s1709_s22  ;;  %s22_s24 = sadd.s32 1, %s1648_s19 }
   0x4   : > { %p20_p0 = scmp.eq.s32.totalorder %s19_s23, 0  ;;  %p29_p1 = scmp.ne.s32.totalorder %s1648_s19, %s1644_s18 }
   0x5   : > { %p30_p2 = scmp.eq.s32.totalorder %s1652_s20, 0  ;;  %p148_p3 = scmp.eq.s32.totalorder %s1706_s21, 1 }
   0x6   : > { %s1719_s25 = scalar_select %p20_p0, %s1648_s19, %s22_s24  }
   0x7   : > { %p31_p4 = por %p30_p2, %p29_p1  ;;  %p1721_p5 = por %p148_p3, %p29_p1 }
   0x8   : > { %p1542_p6 = scmp.ge.s32.totalorder %s1652_s20, 2 }
   0xa   : > { %179 = sbr.rel (%p1542_p6) target bundleno = 21 (0x15), region = 28 }
   0xf   : > { %182 = sbr.rel (!%p31_p4) target bundleno = 21 (0x15), region = 32  ;;  %s184_s27 = sand.u32 (%p31_p4), 1, %s1648_s19  }
  0x10   : > { %s1592_s28 = sshll.u32 (%p31_p4), %s1652_s20, 4  ;;  %s1543_s29 = sshll.u32 (%p31_p4), %s184_s27, 5 }
  0x11   : > { %s189_s7 = scalar_lea.vmem (%p31_p4), %s1933_s0, %s1592_s28  ;;  %s186_s8 = scalar_lea.vmem (%p31_p4), [#allocation2], %s1543_s29 }
  0x12   : > { %v202_v0 = vld [vmem:[%s189_s7] sm:$0xff] (%p31_p4)  ;;  %v204_v1 = vld [vmem:[%s189_s7 + $0x8] sm:$0xff] (%p31_p4) }
  0x13   : > { %v206_v2 = vld [vmem:[%s189_s7 + $0x20] sm:$0xff] (%p31_p4)  ;;  %203 = vst [vmem:[%s186_s8] sm:$0xff] (%p31_p4), %v202_v0  ;;  %205 = vst [vmem:[%s186_s8 + $0x8] sm:$0xff] (%p31_p4), %v204_v1  ;;  %v208_v3 = vld [vmem:[%s189_s7 + $0x28] sm:$0xff] (%p31_p4) }
  0x14   : > { %207 = vst [vmem:[%s186_s8 + $0x10] sm:$0xff] %v206_v2  ;;  %209 = vst [vmem:[%s186_s8 + $0x18] sm:$0xff] %v208_v3 }
  0x15 PF: > { %p1546_p7 = scmp.ge.s32.totalorder %s1652_s20, 1  ;;  %p222_p8 = scmp.lt.s32.totalorder %s1652_s20, 3 }
  0x17   : > { %p223_p9 = pnand %p1546_p7, %p222_p8 }
  0x18   : > { %s229_s11 = sand.u32 (!%p223_p9), 1, %s1644_s18   ;;  %s1656_s18 = smov (!%p223_p9), 1  }
  0x19   : > { %226 = sbr.rel (%p223_p9) target bundleno = 648 (0x288), region = 59  ;;  %s1547_s14 = sshll.u32 (!%p223_p9), %s229_s11, 5 }
  0x1a   : > { %s1548_s15 = sshll.u32 (!%p223_p9), %s229_s11, 7  ;;  %s231_s16 = scalar_lea.vmem (!%p223_p9), [#allocation2], %s1547_s14 }
  0x1b   : > { %s1740_s17 = scalar_lea.vmem (!%p223_p9), [#allocation3], %s1548_s15  ;;  %p261_p10 = scmp.lt.s32.totalorder (!%p223_p9), %s1706_s21, 1 }
  0x1c   : > { %p319_p11 = scmp.gt.s32.totalorder (!%p223_p9), %s1706_s21, 0  ;;  %s1657_s30 = smov (!%p223_p9), 127  }
  0x1d   : > { %s1659_s7 = smov (!%p223_p9), 126  }
  0x1e   : > { %v271_v4 = vld [vmem:[%s1935_s2] sm:$0xf]  ;;  %v1654_v5 = vmov 0   ;;  %v268_v7 = vld [vmem:[%s231_s16 + $0x8] sm:$0xff]  ;;  %v267_v9 = vld [vmem:[%s231_s16] sm:$0xff]  ;;  %v280_v17 = vlaneseq  ;;  %s262_s20 = scalar_select %p261_p10, %s1706_s21, 1 }
  0x1f   : > { %1625 = vset.pattern.permute.xlu0 %v1654_v5  ;;  %v272_v6 = vld [vmem:[%s1936_s3] sm:$0xf]  ;;  %v1359_v8 = vcombine.high %v268_v7, %v268_v7  ;;  %v269_v10 = vld [vmem:[%s231_s16 + $0x10] sm:$0xff]  ;;  %1368 = vst [vmem:[%s1740_s17 + $0x10] sm:$0xf] %v268_v7  ;;  %1366 = vst [vmem:[%s1740_s17] sm:$0xf] %v267_v9  ;;  %v1358_v12 = vcombine.high %v267_v9, %v267_v9 }
  0x20   : > { %275 = vperm.xlu0 %1625, %v271_v4   ;;  %1370 = vst [vmem:[%s1740_s17 + $0x40] sm:$0xf] %v269_v10  ;;  %v270_v11 = vld [vmem:[%s231_s16 + $0x18] sm:$0xff]  ;;  %v1360_v13 = vcombine.high %v269_v10, %v269_v10  ;;  %v1655_v15 = vmov 839922192   ;;  %v281_v19 = vshrl.u32 %v280_v17, 7 }
  0x21   : > { %1369 = vst [vmem:[%s1740_s17 + $0x18] sm:$0xf] %v1359_v8  ;;  %1372 = vst [vmem:[%s1740_s17 + $0x50] sm:$0xf] %v270_v11  ;;  %v1361_v14 = vcombine.high %v270_v11, %v270_v11  ;;  %v278_v16 = vunpack.c.l.s4 %v1655_v15  ;;  %s1593_s23 = sshll.u32 %s262_s20, 3  ;;  %vm355_vm1 = vcmask 7168  }
  0x22   : > { %1367 = vst [vmem:[%s1740_s17 + $0x8] sm:$0xf] %v1358_v12  ;;  %1371 = vst [vmem:[%s1740_s17 + $0x48] sm:$0xf] %v1360_v13  ;;  %s265_s28 = scalar_lea.vmem %s1934_s1, %s1593_s23  ;;  %v1658_v54 = vmov 0.0   ;;  %vm385_vm3 = vcmask 1039360  }
  0x23   : > { %1373 = vst [vmem:[%s1740_s17 + $0x58] sm:$0xf] %v1361_v14  ;;  %v279_v18 = vunpack.c.0.s8 %v278_v16  ;;  %v309_v41 = vld [vmem:[%s265_s28] sm:$0xf]  ;;  %s320_s29 = scalar_select %p319_p11, 1, 0  ;;  %467 = vmatprep.mubr.f32.mxu0 %v1658_v54  ;;  %538 = vmatprep.mubr.f32.mxu1 %v1658_v54 }
  0x24   : > { %291 = vperm.xlu0 %1625, %v272_v6   ;;  %v310_v43 = vld [vmem:[%s265_s28 + $0x4] sm:$0xf]  ;;  %s326_s6 = scalar_select %p261_p10, 1, 0  ;;  %vm394_vm4 = vcmask 1043456   ;;  %v371_v17 = vld [vmem:[%s1937_s4 + $0x8] sm:$0xff] }
  0x25   : > { %v282_v20 = vsub.s32 %v279_v18, %v281_v19  ;;  %v321_v46 = vstv %s320_s29  ;;  %vm390_vm5 = vcmask 31744   ;;  %vm1024_vm6 = vcmask 1031168   ;;  %s1594_s14 = sshll.u32 (%p1721_p5), %s1706_s21, 5 }
  0x26   : > { %vm322_vm0 = vcmp.eq.s32.totalorder %v321_v46, 1  ;;  %v327_v59 = vstv %s326_s6 }
  0x27   : > { %vm328_vm2 = vcmp.eq.s32.totalorder %v327_v59, 1 }
  0x9b   : > { %v276_v21 = vpop.permute.xlu0 %275 }
  0x9c   : > { %v283_v22 = vrot.slane %v276_v21, %v282_v20  ;;  %v312_v42 = vmul.f32 %v309_v41, %v276_v21  ;;  %v313_v45 = vmul.f32 %v310_v43, %v276_v21 }
  0x9e   : > { %v286_v25 = vmul.f32 %v283_v22, %v268_v7  ;;  %v285_v26 = vmul.f32 %v283_v22, %v267_v9  ;;  %v287_v29 = vmul.f32 %v283_v22, %v269_v10  ;;  %v288_v33 = vmul.f32 %v283_v22, %v270_v11 }
  0x9f   : > { %v292_v23 = vpop.permute.xlu0 %291 }
  0xa0   : > { %v299_v24 = vrot.slane %v292_v23, %v282_v20  ;;  %v315_v44 = vadd.f32 %v312_v42, %v292_v23  ;;  %v316_v47 = vadd.f32 %v313_v45, %v292_v23 }
  0xa2   : > { %v302_v27 = vadd.f32 %v299_v24, %v286_v25  ;;  %v301_v28 = vadd.f32 %v299_v24, %v285_v26  ;;  %v303_v32 = vadd.f32 %v299_v24, %v287_v29  ;;  %v304_v36 = vadd.f32 %v299_v24, %v288_v33 }
  0xa3   : > { %v317_v48 = vmax.f32 %v315_v44, 0.0  ;;  %v318_v49 = vmax.f32 %v316_v47, 0.0 }
  0xa4   : > { %v306_v30 = vmax.f32 %v302_v27, 0.0  ;;  %v305_v31 = vmax.f32 %v301_v28, 0.0  ;;  %v307_v35 = vmax.f32 %v303_v32, 0.0  ;;  %v308_v37 = vmax.f32 %v304_v36, 0.0 }
  0xa5   : > { %v323_v52 = vsel %vm322_vm0, %v317_v48, 0.0  ;;  %v324_v57 = vsel %vm322_vm0, %v318_v49, 0.0  ;;  %v329_v0 = vsel %vm328_vm2, %v317_v48, 0.0  ;;  %v330_v7 = vsel %vm328_vm2, %v318_v49, 0.0 }
  0xa6   : > { %343 = vrot.lane.b32.xlu0 %v306_v30, %s1656_s18  ;;  %339 = vrot.lane.b32.xlu1 %v305_v31, %s1656_s18  ;;  %v335_v34 = vcombine.high %v305_v31, %v305_v31  ;;  %v336_v38 = vcombine.high %v306_v30, %v306_v30  ;;  %v337_v39 = vcombine.high %v307_v35, %v307_v35  ;;  %v370_v30 = vld [vmem:[%s1937_s4] sm:$0xff] }
  0xa7   : > { %v338_v40 = vcombine.high %v308_v37, %v308_v37 }
  0xaa   : > { %347 = vrot.lane.b32.xlu0 %v307_v35, %s1656_s18  ;;  %341 = vrot.lane.b32.xlu1 %v335_v34, %s1656_s18 }
  0xae   : > { %351 = vrot.lane.b32.xlu0 %v308_v37, %s1656_s18  ;;  %345 = vrot.lane.b32.xlu1 %v336_v38, %s1656_s18  ;;  %v372_v38 = vld [vmem:[%s1937_s4 + $0x10] sm:$0xff] }
  0xb2   : > { %349 = vrot.lane.b32.xlu1 %v337_v39, %s1656_s18 }
  0xb6   : > { %353 = vrot.lane.b32.xlu1 %v338_v40, %s1656_s18  ;;  %s1423_s18 = scalar_lea.vmem (%p1721_p5), %s1938_s5, %s1594_s14 }
 0x118   : > { %v344_v50 = vpop.permute.xlu0 %343  ;;  %v340_v51 = vpop.permute.xlu1 %339 }
 0x119   : > { %v1759_v53 = vsel %vm355_vm1, %v323_v52, %v340_v51 }
 0x11a   : > { %375 = vrot.lane.b32.xlu0 %v1759_v53, %s1657_s30 }
 0x11c   : > { %v348_v55 = vpop.permute.xlu0 %347  ;;  %v342_v56 = vpop.permute.xlu1 %341 }
 0x11d   : > { %v1768_v58 = vsel %vm355_vm1, %v324_v57, %v348_v55  ;;  %v1775_v61 = vsel %vm355_vm1, %v342_v56, %v344_v50  ;;  %v356_v62 = vsel %vm355_vm1, %v340_v51, %v342_v56 }
 0x11e   : > { %1014 = vrot.lane.b32.xlu0 %v1759_v53, %s1659_s7  ;;  %547 = vrot.lane.b32.xlu1 %v1768_v58, %s1657_s30 }
 0x120   : > { %v346_v60 = vpop.permute.xlu1 %345  ;;  %v352_v3 = vpop.permute.xlu0 %351 }
 0x121   : > { %v368_v1 = vsel %vm355_vm1, %v346_v60, %v329_v0  ;;  %v1783_v2 = vsel %vm355_vm1, %v344_v50, %v346_v60 }
 0x122   : > { %379 = vrot.lane.b32.xlu1 %v1775_v61, %s1657_s30  ;;  %377 = vrot.lane.b32.xlu0 %v356_v62, %s1657_s30 }
 0x124   : > { %v350_v63 = vpop.permute.xlu1 %349 }
 0x125   : > { %v1789_v4 = vsel %vm355_vm1, %v350_v63, %v352_v3  ;;  %v359_v5 = vsel %vm355_vm1, %v348_v55, %v350_v63 }
 0x126   : > { %383 = vrot.lane.b32.xlu1 %v368_v1, %s1657_s30  ;;  %381 = vrot.lane.b32.xlu0 %v1783_v2, %s1657_s30 }
 0x128   : > { %v354_v6 = vpop.permute.xlu1 %353 }
 0x129   : > { %v369_v8 = vsel %vm355_vm1, %v354_v6, %v330_v7  ;;  %v1797_v9 = vsel %vm355_vm1, %v352_v3, %v354_v6 }
 0x12a   : > { %551 = vrot.lane.b32.xlu0 %v1789_v4, %s1657_s30  ;;  %549 = vrot.lane.b32.xlu1 %v359_v5, %s1657_s30 }
 0x12e   : > { %555 = vrot.lane.b32.xlu0 %v369_v8, %s1657_s30  ;;  %553 = vrot.lane.b32.xlu1 %v1797_v9, %s1657_s30 }
 0x132   : > { %1016 = vrot.lane.b32.xlu0 %v356_v62, %s1659_s7  ;;  %1018 = vrot.lane.b32.xlu1 %v1775_v61, %s1659_s7 }
 0x136   : > { %1020 = vrot.lane.b32.xlu0 %v1783_v2, %s1659_s7  ;;  %1022 = vrot.lane.b32.xlu1 %v368_v1, %s1659_s7 }
 0x13a   : > { %1186 = vrot.lane.b32.xlu0 %v1789_v4, %s1659_s7  ;;  %1184 = vrot.lane.b32.xlu1 %v359_v5, %s1659_s7 }
 0x13e   : > { %1190 = vrot.lane.b32.xlu0 %v369_v8, %s1659_s7  ;;  %1188 = vrot.lane.b32.xlu1 %v1797_v9, %s1659_s7 }
 0x142   : > { %1182 = vrot.lane.b32.xlu1 %v1768_v58, %s1659_s7 }
 0x18c   : > { %v376_v10 = vpop.permute.xlu0 %375 }
 0x190   : > { %v1015_v11 = vpop.permute.xlu0 %1014  ;;  %v548_v12 = vpop.permute.xlu1 %547 }
 0x194   : > { %v378_v13 = vpop.permute.xlu0 %377  ;;  %v380_v14 = vpop.permute.xlu1 %379 }
 0x195   : > { %v387_v15 = vsel %vm385_vm3, %v378_v13, %v380_v14  ;;  %v386_v16 = vsel %vm385_vm3, %v376_v10, %v378_v13 }
 0x196   : > { %1551 = vmatprep.subr.msk.mxu0 %vm394_vm4, %v387_v15 }
 0x197   : > { %1552 = vmatpush1.msk.msra.mxu0 %vm394_vm4, %v386_v16 }
 0x198   : > { %v382_v18 = vpop.permute.xlu0 %381  ;;  %v384_v19 = vpop.permute.xlu1 %383  ;;  %1553 = vmatmul.mubr.msk.f32.vlgmr.msra.gmra.mxu0 %vm390_vm5, %v371_v17 }
 0x199   : > { %v389_v20 = vsel %vm385_vm3, %v382_v18, %v384_v19  ;;  %v388_v21 = vsel %vm385_vm3, %v380_v14, %v382_v18  ;;  %633 = vmatprep.mubr.f32.mxu0 %v1658_v54 }
 0x19a   : > { %1554 = vmatprep.subr.msk.mxu1 %vm394_vm4, %v389_v20 }
 0x19b   : > { %1555 = vmatpush1.msk.msra.mxu1 %vm394_vm4, %v388_v21 }
 0x19c   : > { %v552_v22 = vpop.permute.xlu0 %551  ;;  %v550_v23 = vpop.permute.xlu1 %549  ;;  %1556 = vmatmul.mubr.msk.f32.vlgmr.msra.gmra.mxu1 %vm390_vm5, %v371_v17 }
 0x19d   : > { %v557_v24 = vsel %vm385_vm3, %v548_v12, %v550_v23  ;;  %v558_v25 = vsel %vm385_vm3, %v550_v23, %v552_v22  ;;  %704 = vmatprep.mubr.f32.mxu1 %v1658_v54 }
 0x19e   : > { %1557 = vmatprep.subr.msk.mxu0 %vm394_vm4, %v558_v25 }
 0x19f   : > { %1558 = vmatpush1.msk.msra.mxu0 %vm394_vm4, %v557_v24 }
 0x1a0   : > { %v556_v26 = vpop.permute.xlu0 %555  ;;  %1559 = vmatmul.mubr.msk.f32.vlgmr.msra.gmra.mxu0 %vm390_vm5, %v371_v17  ;;  %1563 = vmatprep.subr.msk.mxu0 %vm394_vm4, %v356_v62  ;;  %v554_v27 = vpop.permute.xlu1 %553 }
 0x1a1   : > { %v559_v28 = vsel %vm385_vm3, %v552_v22, %v554_v27  ;;  %v560_v29 = vsel %vm385_vm3, %v554_v27, %v556_v26  ;;  %1564 = vmatpush1.msk.msra.mxu0 %vm394_vm4, %v1759_v53  ;;  %786 = vmatprep.mubr.f32.mxu0 %v1658_v54 }
 0x1a2   : > { %1560 = vmatprep.subr.msk.mxu1 %vm394_vm4, %v560_v29  ;;  %1569 = vmatprep.subr.msk.mxu0 %vm394_vm4, %v359_v5 }
 0x1a3   : > { %1561 = vmatpush1.msk.msra.mxu1 %vm394_vm4, %v559_v28 }
 0x1a4   : > { %v1017_v31 = vpop.permute.xlu0 %1016  ;;  %1562 = vmatmul.mubr.msk.f32.vlgmr.msra.gmra.mxu1 %vm390_vm5, %v371_v17  ;;  %1565 = vmatmul.mubr.msk.f32.vlgmr.msra.gmra.mxu0 %vm390_vm5, %v370_v30  ;;  %v1019_v32 = vpop.permute.xlu1 %1018 }
 0x1a5   : > { %1566 = vmatprep.subr.msk.mxu1 %vm394_vm4, %v1783_v2  ;;  %1570 = vmatpush1.msk.msra.mxu0 %vm394_vm4, %v1768_v58  ;;  %v1026_v33 = vsel %vm1024_vm6, %v1017_v31, %v1019_v32  ;;  %v1025_v36 = vsel %vm1024_vm6, %v1015_v11, %v1017_v31 }
 0x1a6   : > { %1567 = vmatpush1.msk.msra.mxu1 %vm394_vm4, %v1775_v61  ;;  %1575 = vmatprep.subr.msk.mxu0 %vm394_vm4, %v1026_v33 }
 0x1a7   : > { %1572 = vmatprep.subr.msk.mxu1 %vm394_vm4, %v1797_v9  ;;  %857 = vmatprep.mubr.f32.mxu1 %v1658_v54 }
 0x1a8   : > { %936 = vmatprep.mubr.f32.mxu0 %v1658_v54  ;;  %v1021_v34 = vpop.permute.xlu0 %1020  ;;  %1568 = vmatmul.mubr.msk.f32.vlgmr.msra.gmra.mxu1 %vm390_vm5, %v370_v30  ;;  %v1023_v35 = vpop.permute.xlu1 %1022 }
 0x1a9   : > { %1571 = vmatmul.mubr.msk.f32.vlgmr.msra.gmra.mxu0 %vm390_vm5, %v370_v30  ;;  %1573 = vmatpush1.msk.msra.mxu1 %vm394_vm4, %v1789_v4  ;;  %v1028_v37 = vsel %vm1024_vm6, %v1021_v34, %v1023_v35  ;;  %v1027_v39 = vsel %vm1024_vm6, %v1019_v32, %v1021_v34 }
 0x1aa   : > { %1576 = vmatpush1.msk.msra.mxu0 %vm394_vm4, %v1025_v36  ;;  %1578 = vmatprep.subr.msk.mxu1 %vm394_vm4, %v1028_v37 }
 0x1ab   : > { %1007 = vmatprep.mubr.f32.mxu1 %v1658_v54  ;;  %1104 = vmatprep.mubr.f32.mxu0 %v1658_v54 }
 0x1ac   : > { %v1187_v40 = vpop.permute.xlu0 %1186  ;;  %1574 = vmatmul.mubr.msk.f32.vlgmr.msra.gmra.mxu1 %vm390_vm5, %v370_v30  ;;  %v1185_v41 = vpop.permute.xlu1 %1184 }
 0x1ad   : > { %1577 = vmatmul.mubr.msk.f32.vlgmr.msra.gmra.mxu0 %vm390_vm5, %v372_v38  ;;  %1579 = vmatpush1.msk.msra.mxu1 %vm394_vm4, %v1027_v39  ;;  %v1193_v42 = vsel %vm1024_vm6, %v1185_v41, %v1187_v40 }
 0x1ae   : > { %1581 = vmatprep.subr.msk.mxu0 %vm394_vm4, %v1193_v42  ;;  %1175 = vmatprep.mubr.f32.mxu1 %v1658_v54 }
 0x1af   : > { %1268 = vmatprep.mubr.f32.mxu0 %v1658_v54 }
 0x1b0   : > { %v1191_v43 = vpop.permute.xlu0 %1190  ;;  %1580 = vmatmul.mubr.msk.f32.vlgmr.msra.gmra.mxu1 %vm390_vm5, %v372_v38  ;;  %v1189_v44 = vpop.permute.xlu1 %1188 }
 0x1b1   : > { %v1194_v45 = vsel %vm1024_vm6, %v1187_v40, %v1189_v44  ;;  %v1195_v46 = vsel %vm1024_vm6, %v1189_v44, %v1191_v43  ;;  %1339 = vmatprep.mubr.f32.mxu1 %v1658_v54 }
 0x1b2   : > { %1584 = vmatprep.subr.msk.mxu1 %vm394_vm4, %v1195_v46 }
 0x1b3   : > { %1585 = vmatpush1.msk.msra.mxu1 %vm394_vm4, %v1194_v45 }
 0x1b4   : > { %1586 = vmatmul.mubr.msk.f32.vlgmr.msra.gmra.mxu1 %vm390_vm5, %v372_v38  ;;  %v1183_v47 = vpop.permute.xlu1 %1182 }
 0x1b5   : > { %v1192_v48 = vsel %vm1024_vm6, %v1183_v47, %v1185_v41 }
 0x1b6   : > { %1582 = vmatpush1.msk.msra.mxu0 %vm394_vm4, %v1192_v48 }
 0x1b7   : > { %1583 = vmatmul.mubr.msk.f32.vlgmr.msra.gmra.mxu0 %vm390_vm5, %v372_v38 }
 0x258   : > { %v469_v49 = vpop.f32.mrf.mxu0 }
 0x25a   : > { %v471_v50 = vpop.f32.mrf.mxu0 }
 0x25c   : > { %v540_v51 = vpop.f32.mrf.mxu1 }
 0x25e   : > { %v542_v53 = vpop.f32.mrf.mxu1 }
 0x260   : > { %v635_v52 = vpop.f32.mrf.mxu0 }
 0x262   : > { %v637_v55 = vpop.f32.mrf.mxu0 }
 0x264   : > { %v706_v54 = vpop.f32.mrf.mxu1  ;;  %v788_v56 = vpop.f32.mrf.mxu0 }
 0x265   : > { %v789_v63 = vadd.f32 %v788_v56, %v469_v49 }
 0x266   : > { %v708_v57 = vpop.f32.mrf.mxu1  ;;  %v790_v58 = vpop.f32.mrf.mxu0 }
 0x267   : > { %v791_v2 = vadd.f32 %v790_v58, %v471_v50 }
 0x268   : > { %v859_v59 = vpop.f32.mrf.mxu1 }
 0x269   : > { %v938_v60 = vpop.f32.mrf.mxu0  ;;  %v860_v5 = vadd.f32 %v859_v59, %v540_v51 }
 0x26a   : > { %v861_v61 = vpop.f32.mrf.mxu1  ;;  %v939_v21 = vadd.f32 %v938_v60, %v635_v52 }
 0x26b   : > { %v940_v62 = vpop.f32.mrf.mxu0  ;;  %v862_v10 = vadd.f32 %v861_v61, %v542_v53 }
 0x26c   : > { %v1009_v0 = vpop.f32.mrf.mxu1  ;;  %v941_v26 = vadd.f32 %v940_v62, %v637_v55 }
 0x26d   : > { %v1106_v1 = vpop.f32.mrf.mxu0  ;;  %v1010_v14 = vadd.f32 %v1009_v0, %v706_v54 }
 0x26e   : > { %v1346_v3 = vadd.f32 %v1106_v1, %v789_v63  ;;  %v1011_v4 = vpop.f32.mrf.mxu1 }
 0x26f   : > { %v1108_v6 = vpop.f32.mrf.mxu0  ;;  %v1012_v18 = vadd.f32 %v1011_v4, %v708_v57 }
 0x270   : > { %v1382_v7 = vrot.slane %v1346_v3, 4  ;;  %v1347_v8 = vadd.f32 %v1108_v6, %v791_v2  ;;  %v1177_v9 = vpop.f32.mrf.mxu1 }
 0x271   : > { %v1348_v11 = vadd.f32 %v1177_v9, %v860_v5 }
 0x272   : > { %1398 = vst [vmem:[%s1740_s17 + $0x20] ss:$-28 sps:$4 sm:$0xff] %v1382_v7   ;;  %v1383_v12 = vrot.slane %v1347_v8, 4  ;;  %v1179_v13 = vpop.f32.mrf.mxu1 }
 0x273   : > { %v1384_v15 = vrot.slane %v1348_v11, 4  ;;  %v1349_v16 = vadd.f32 %v1179_v13, %v862_v10 }
 0x274   : > { %1399 = vst [vmem:[%s1740_s17 + $0x28] ss:$-28 sps:$4 sm:$0xff] %v1383_v12   ;;  %v1341_v17 = vpop.f32.mrf.mxu1 }
 0x275   : > { %1400 = vst [vmem:[%s1740_s17 + $0x30] ss:$-28 sps:$4 sm:$0xff] %v1384_v15   ;;  %v1385_v19 = vrot.slane %v1349_v16, 4  ;;  %v1352_v20 = vadd.f32 %v1341_v17, %v1010_v14 }
 0x276   : > { %v1343_v22 = vpop.f32.mrf.mxu1 }
 0x277   : > { %1401 = vst [vmem:[%s1740_s17 + $0x38] ss:$-28 sps:$4 sm:$0xff] %v1385_v19   ;;  %v1388_v23 = vrot.slane %v1352_v20, 4  ;;  %v1353_v24 = vadd.f32 %v1343_v22, %v1012_v18  ;;  %v1270_v25 = vpop.f32.mrf.mxu0 }
 0x278   : > { %v1350_v27 = vadd.f32 %v1270_v25, %v939_v21 }
 0x279   : > { %1408 = vst [vmem:[%s1740_s17 + $0x70] ss:$-28 sps:$4 sm:$0xff] %v1388_v23   ;;  %v1389_v28 = vrot.slane %v1353_v24, 4  ;;  %v1272_v29 = vpop.f32.mrf.mxu0  ;;  %v1436_v33 = vld [vmem:[%s1740_s17] sm:$0xff] (%p1721_p5) }
 0x27a   : > { %v1386_v30 = vrot.slane %v1350_v27, 4  ;;  %v1351_v31 = vadd.f32 %v1272_v29, %v941_v26  ;;  %1420 = sbr.rel (!%p1721_p5) target bundleno = 648 (0x288), region = 67  ;;  %v1444_v37 = vld [vmem:[%s1740_s17 + $0x20] sm:$0xff] (%p1721_p5)  ;;  %1437 = vst [vmem:[%s1423_s18] sm:$0xff] (%p1721_p5), %v1436_v33 }
 0x27b   : > { %1409 = vst [vmem:[%s1740_s17 + $0x78] ss:$-28 sps:$4 sm:$0xff] %v1389_v28   ;;  %v1438_v34 = vld [vmem:[%s1740_s17 + $0x8] sm:$0xff] (%p1721_p5)  ;;  %1445 = vst [vmem:[%s1423_s18 + $0x40] sm:$0xff] (%p1721_p5), %v1444_v37 }
 0x27c   : > { %1406 = vst [vmem:[%s1740_s17 + $0x60] ss:$-28 sps:$4 sm:$0xff] %v1386_v30   ;;  %v1387_v32 = vrot.slane %v1351_v31, 4  ;;  %v1440_v35 = vld [vmem:[%s1740_s17 + $0x10] sm:$0xff] (%p1721_p5)  ;;  %v1446_v38 = vld [vmem:[%s1740_s17 + $0x28] sm:$0xff] (%p1721_p5)  ;;  %1439 = vst [vmem:[%s1423_s18 + $0x8] sm:$0xff] (%p1721_p5), %v1438_v34 }
 0x27d   : > { %1441 = vst [vmem:[%s1423_s18 + $0x10] sm:$0xff] (%p1721_p5), %v1440_v35  ;;  %1447 = vst [vmem:[%s1423_s18 + $0x48] sm:$0xff] (%p1721_p5), %v1446_v38  ;;  %v1448_v39 = vld [vmem:[%s1740_s17 + $0x30] sm:$0xff] (%p1721_p5) }
 0x27e   : > { %1407 = vst [vmem:[%s1740_s17 + $0x68] ss:$-28 sps:$4 sm:$0xff] %v1387_v32   ;;  %v1442_v36 = vld [vmem:[%s1740_s17 + $0x18] sm:$0xff] (%p1721_p5)  ;;  %1449 = vst [vmem:[%s1423_s18 + $0x50] sm:$0xff] (%p1721_p5), %v1448_v39 }
 0x27f   : > { %1443 = vst [vmem:[%s1423_s18 + $0x18] sm:$0xff] %v1442_v36  ;;  %v1450_v40 = vld [vmem:[%s1740_s17 + $0x38] sm:$0xff] }
 0x280   : > { %1451 = vst [vmem:[%s1423_s18 + $0x58] sm:$0xff] %v1450_v40  ;;  %v1456_v43 = vld [vmem:[%s1740_s17 + $0x50] sm:$0xff] }
 0x281   : > { %1457 = vst [vmem:[%s1423_s18 + $0x90] sm:$0xff] %v1456_v43  ;;  %v1464_v47 = vld [vmem:[%s1740_s17 + $0x70] sm:$0xff] }
 0x282   : > { %v1458_v44 = vld [vmem:[%s1740_s17 + $0x58] sm:$0xff]  ;;  %1465 = vst [vmem:[%s1423_s18 + $0xd0] sm:$0xff] %v1464_v47 }
 0x283   : > { %v1452_v41 = vld [vmem:[%s1740_s17 + $0x40] sm:$0xff]  ;;  %1459 = vst [vmem:[%s1423_s18 + $0x98] sm:$0xff] %v1458_v44  ;;  %v1466_v48 = vld [vmem:[%s1740_s17 + $0x78] sm:$0xff] }
 0x284   : > { %1453 = vst [vmem:[%s1423_s18 + $0x80] sm:$0xff] %v1452_v41  ;;  %v1460_v45 = vld [vmem:[%s1740_s17 + $0x60] sm:$0xff]  ;;  %1467 = vst [vmem:[%s1423_s18 + $0xd8] sm:$0xff] %v1466_v48 }
 0x285   : > { %v1454_v42 = vld [vmem:[%s1740_s17 + $0x48] sm:$0xff]  ;;  %1461 = vst [vmem:[%s1423_s18 + $0xc0] sm:$0xff] %v1460_v45 }
 0x286   : > { %1455 = vst [vmem:[%s1423_s18 + $0x88] sm:$0xff] %v1454_v42  ;;  %v1462_v46 = vld [vmem:[%s1740_s17 + $0x68] sm:$0xff] }
 0x287   : > { %1463 = vst [vmem:[%s1423_s18 + $0xc8] sm:$0xff] %v1462_v46 }
 0x288 PF: > { %p12_p12 = scmp.ge.s32.totalorder %s1709_s22, 4   ;;  %s1940_s18 = smov %s1648_s19 }
 0x289   : > { %s1941_s19 = smov %s1719_s25  ;;  %s1942_s20 = smov %s1709_s22 }
 0x28a   :  { %14 = sbr.rel (!%p12_p12) target bundleno = 2 (0x2), region = 124 }

</bundles_post_ra>
